<compile_context>
chip_gen: v5e
topology: v5e:2x2
jax: 0.10.0
libtpu: 0.0.40
codegen_flags: <defaults>
</compile_context>

<pallas_src>
import functools

import jax
import jax.numpy as jnp
import numpy as np
from jax import lax
from jax.experimental import pallas as pl
from jax.experimental.pallas import tpu as pltpu


BUFFER_COLS = 53  # matches torch.full((len(lambdas), 53), nan)


def _round_up(x, m):
    return (x + m - 1) // m * m


# ----------------------------------------------------------------------------
# Fused kernel: per-field MSE reduction + buffer update + eps auto-tune + total
# ----------------------------------------------------------------------------
def _make_kernel(num_heads, nfs, tile_m, m_total, n_batch, n_fields, ncol):
    n_chunks = tile_m // 128
    ragged = (m_total % tile_m) != 0          # static: only mask if needed
    inv_valid = 1.0 / float(n_batch * m_total)
    inv_ncol = 1.0 / float(ncol)
    inv_nfields = 1.0 / float(n_fields)

    def kernel(idx_ref, *refs):
        field_refs = refs[0:2 * num_heads:2]
        target_refs = refs[1:2 * num_heads:2]
        lam_ref = refs[2 * num_heads]
        buf_ref = refs[2 * num_heads + 1]
        stats_ref = refs[2 * num_heads + 2]
        buffer_out_ref = refs[2 * num_heads + 3]
        acc_refs = refs[2 * num_heads + 4:]

        b = pl.program_id(0)
        m = pl.program_id(1)
        first = (b == 0) & (m == 0)
        last = ((b == pl.num_programs(0) - 1)
                & (m == pl.num_programs(1) - 1))

        @pl.when(first)
        def _():
            for acc in acc_refs:
                acc[...] = jnp.zeros_like(acc)

        # --- streamed squared-error accumulation (lane-aligned, pure VPU) ---
        for h in range(num_heads):
            nf = nfs[h]
            f_ref = field_refs[h]          # (nf, tile_m) block of head h fields
            t_ref = target_refs[h]
            partial = jnp.zeros((nf, 128), jnp.float32)
            for c in range(n_chunks):
                lo = c * 128
                fv = f_ref[:, lo:lo + 128]
                tv = t_ref[:, lo:lo + 128]
                d = fv - tv
                d2 = d * d
                if ragged:
                    col = (m * tile_m + lo
                           + lax.broadcasted_iota(jnp.int32, (nf, 128), 1))
                    d2 = jnp.where(col < m_total, d2, 0.0)
                partial = partial + d2
            acc_refs[h][...] += partial

        # --- epilogue: losses, circular buffer, eps auto-tune, total --------
        @pl.when(last)
        def _():
            per_head = [jnp.sum(acc_refs[h][...], axis=1, keepdims=True)
                        * inv_valid for h in range(num_heads)]
            losses = (per_head[0] if num_heads == 1
                      else jnp.concatenate(per_head, axis=0))       # (L, 1)

            # circular buffer update: column `new_idx` <- losses
            new_idx = idx_ref[0]
            buf = buf_ref[...]                                       # (L, ncol)
            colb = lax.broadcasted_iota(jnp.int32, buf.shape, 1)
            buf = jnp.where(colb == new_idx, losses, buf)
            buffer_out_ref[...] = buf

            # variance-based epsilons (centered two-pass form)
            mean = jnp.sum(buf, axis=1, keepdims=True) * inv_ncol
            cent = buf - mean
            var = jnp.sum(cent * cent, axis=1, keepdims=True) * inv_ncol
            eps = jnp.sqrt(var)
            eps = jnp.where(eps != eps, 10.0, eps)                   # NaN -> 10
            eps = jnp.clip(eps, 0.01, 100.0)
            inv_sum = jnp.sum(1.0 / eps)
            eps = eps * (inv_sum * inv_nfields)

            total = jnp.sum(lam_ref[...] * losses / eps)             # scalar

            # lane-dense packed stats output: lane0=loss, lane1=eps, lane2=total
            lane = lax.broadcasted_iota(jnp.int32, stats_ref.shape, 1)
            stats = jnp.where(lane == 0, losses, 0.0)
            stats = jnp.where(lane == 1, eps, stats)
            stats = jnp.where(lane == 2, total, stats)
            stats_ref[...] = stats

    return kernel


# ----------------------------------------------------------------------------
# Functional wrapper (state in / state out)
# ----------------------------------------------------------------------------
def multihead_loss_forward(head_fields, head_targets, lambdas, buffer,
                           buffer_index, *, tile_m=16384):
    """Forward of MultiHeadLossAutoTuneVariance with per-field MSE losses.

    Returns (total_loss, flat_head_losses, epsilons, new_buffer, new_index).
    """
    assert len(head_fields) == len(head_targets) >= 1
    assert all(lam >= 0.0 for lam in lambdas)

    num_heads = len(head_fields)
    B = head_fields[0].shape[0]
    M = int(np.prod(head_fields[0].shape[2:]))

    nfs, fields3d, targets3d = [], [], []
    for f, t in zip(head_fields, head_targets):
        assert f.shape == t.shape
        assert f.shape[0] == B and int(np.prod(f.shape[2:])) == M, \
            "all heads must share batch and spatial extents"
        nf = f.shape[1]
        nfs.append(nf)
        # (B, nf, H, W) -> (B, nf, H*W) is a layout-free reshape (no copy).
        fields3d.append(f.reshape(B, nf, M).astype(jnp.float32))
        targets3d.append(t.reshape(B, nf, M).astype(jnp.float32))

    L = sum(nfs)
    ncol = buffer.shape[1]
    assert L == len(lambdas) == buffer.shape[0]

    # Lane-dense tile of the flattened spatial reduction axis.  Large tiles so
    # each grid step moves ~MiB (per-step pipeline overhead amortized); clamp
    # to the actual extent and to a VMEM-friendly ceiling.
    tile_m = max(128, (min(int(tile_m), 65536) // 128) * 128)
    tile_m = min(tile_m, _round_up(M, 128))
    n_tiles = pl.cdiv(M, tile_m)

    new_index = (jnp.asarray(buffer_index, jnp.int32) + 1) % ncol
    lam2d = jnp.asarray(lambdas, jnp.float32).reshape(L, 1)
    buffer = buffer.astype(jnp.float32)

    kernel = _make_kernel(num_heads, tuple(nfs), tile_m, M, B, L, ncol)

    operands, in_specs = [], []
    for fh, th, nf in zip(fields3d, targets3d, nfs):
        spec = pl.BlockSpec((pl.Squeezed(), nf, tile_m),
                            lambda b, m, idx: (b, 0, m))
        operands += [fh, th]
        in_specs += [spec, spec]
    operands += [lam2d, buffer]
    in_specs += [
        pl.BlockSpec((L, 1), lambda b, m, idx: (0, 0)),      # lambdas
        pl.BlockSpec((L, ncol), lambda b, m, idx: (0, 0)),   # loss buffer
    ]

    grid_spec = pltpu.PrefetchScalarGridSpec(
        num_scalar_prefetch=1,
        grid=(B, n_tiles),
        in_specs=in_specs,
        out_specs=[
            pl.BlockSpec((L, 128), lambda b, m, idx: (0, 0)),   # packed stats
            pl.BlockSpec((L, ncol), lambda b, m, idx: (0, 0)),  # new buffer
        ],
        scratch_shapes=[pltpu.VMEM((nf, 128), jnp.float32) for nf in nfs],
    )

    stats, new_buffer = pl.pallas_call(
        kernel,
        out_shape=(
            jax.ShapeDtypeStruct((L, 128), jnp.float32),
            jax.ShapeDtypeStruct((L, ncol), jnp.float32),
        ),
        grid_spec=grid_spec,
        compiler_params=pltpu.CompilerParams(
            dimension_semantics=("arbitrary", "arbitrary"),  # both axes reduce
            vmem_limit_bytes=32 << 20),
    )(new_index.reshape(1), *operands)

    total = stats[0, 2]
    flat = stats[:, 0]
    eps = stats[:, 1]
    return total, flat, eps, new_buffer, new_index


# ----------------------------------------------------------------------------
# Pure-JAX reference mirroring the PyTorch module math
# ----------------------------------------------------------------------------
def multihead_loss_reference(head_fields, head_targets, lambdas, buffer,
                             buffer_index):
    flat = []
    for f, t in zip(head_fields, head_targets):
        diff = f.astype(jnp.float32) - t.astype(jnp.float32)
        flat.append(jnp.mean(diff * diff, axis=(0, 2, 3)))
    flat = jnp.concatenate(flat)

    buffer = buffer.astype(jnp.float32)
    new_index = (int(buffer_index) + 1) % buffer.shape[1]
    buffer = buffer.at[:, new_index].set(flat)

    eps = jnp.sqrt(jnp.mean(buffer ** 2, axis=1)
                   - jnp.sum(buffer, axis=1) ** 2 / buffer.shape[1] ** 2)
    eps = jnp.where(jnp.isnan(eps), 10.0, eps)
    eps = jnp.clip(eps, 0.01, 100.0)
    eps = eps * jnp.sum(1.0 / eps) / eps.shape[0]

    lam = jnp.asarray(lambdas, jnp.float32)
    total = jnp.sum(lam * flat / eps)
    return total, flat, eps, buffer, new_index


if __name__ == "__main__":
    key = jax.random.PRNGKey(0)

    # two loss heads, 4 field-losses each -> 8 auto-tuned loss terms
    B, H, W = 2, 16, 16
    fields_per_loss = (4, 4)
    L = sum(fields_per_loss)
    lambdas = [1.0, 1.0, 0.5, 1.0, 1.0, 0.25, 1.0, 1.0]

    keys = jax.random.split(key, 2 * len(fields_per_loss) + 1)
    head_fields = [jax.random.normal(keys[2 * i], (B, nf, H, W), jnp.float32)
                   for i, nf in enumerate(fields_per_loss)]
    head_targets = [jax.random.normal(keys[2 * i + 1], (B, nf, H, W), jnp.float32)
                    for i, nf in enumerate(fields_per_loss)]

    # ---- call 1: fresh module state (buffer full of NaN, buffer_index = -1) ----
    buffer0 = jnp.full((L, BUFFER_COLS), jnp.nan, jnp.float32)
    total, flat, eps, buffer1, idx1 = multihead_loss_forward(
        head_fields, head_targets, lambdas, buffer0, -1)
    total = jax.block_until_ready(total)

    t_ref, f_ref, e_ref, b_ref, i_ref = multihead_loss_reference(
        head_fields, head_targets, lambdas, buffer0, -1)
    np.testing.assert_allclose(np.asarray(total), np.asarray(t_ref),
                               rtol=1e-3, atol=1e-5)
    np.testing.assert_allclose(np.asarray(flat), np.asarray(f_ref),
                               rtol=1e-5, atol=1e-6)
    np.testing.assert_allclose(np.asarray(eps), np.asarray(e_ref),
                               rtol=1e-4, atol=1e-6)
    np.testing.assert_allclose(np.asarray(buffer1), np.asarray(b_ref),
                               rtol=1e-5, atol=1e-6)
    assert int(idx1) == i_ref

    # ---- call 2: warm state (finite loss history) exercises the variance path ----
    warm = 0.5 + jax.random.uniform(keys[-1], (L, BUFFER_COLS), jnp.float32)
    total2, flat2, eps2, buffer2, idx2 = multihead_loss_forward(
        head_fields, head_targets, lambdas, warm, idx1)
    total2 = jax.block_until_ready(total2)

    t2, f2, e2, b2, i2 = multihead_loss_reference(
        head_fields, head_targets, lambdas, warm, int(idx1))
    np.testing.assert_allclose(np.asarray(total2), np.asarray(t2),
                               rtol=1e-3, atol=1e-5)
    np.testing.assert_allclose(np.asarray(flat2), np.asarray(f2),
                               rtol=1e-5, atol=1e-6)
    np.testing.assert_allclose(np.asarray(eps2), np.asarray(e2),
                               rtol=1e-3, atol=1e-5)
    np.testing.assert_allclose(np.asarray(buffer2), np.asarray(b2),
                               rtol=1e-5, atol=1e-6)
    assert int(idx2) == i2

    print("KERNEL_OK")
</pallas_src>

<mosaic_0001>
module attributes {stable_mosaic.version = 11 : i64} {
  func.func @kernel(%arg0: i32, %arg1: i32, %arg2: memref<1xi32, #tpu.memory_space<smem>>, %arg3: memref<1x4x256xf32, #tpu.memory_space<vmem>>, %arg4: memref<1x4x256xf32, #tpu.memory_space<vmem>>, %arg5: memref<1x4x256xf32, #tpu.memory_space<vmem>>, %arg6: memref<1x4x256xf32, #tpu.memory_space<vmem>>, %arg7: memref<8x1xf32, #tpu.memory_space<vmem>>, %arg8: memref<8x53xf32, #tpu.memory_space<vmem>>, %arg9: memref<8x128xf32, #tpu.memory_space<vmem>>, %arg10: memref<8x53xf32, #tpu.memory_space<vmem>>, %arg11: memref<4x128xf32, #tpu.memory_space<vmem>>, %arg12: memref<4x128xf32, #tpu.memory_space<vmem>>) attributes {dimension_semantics = [#tpu.dimension_semantics<arbitrary>, #tpu.dimension_semantics<arbitrary>], iteration_bounds = array<i64: 2, 1>, scalar_prefetch = 1 : i64, scratch_operands = 2 : i64, tpu.core_type = #tpu.core_type<tc>, window_params = [{transform_indices = @transform_0, window_bounds = array<i64: 1, 4, 256>}, {transform_indices = @transform_1, window_bounds = array<i64: 1, 4, 256>}, {transform_indices = @transform_2, window_bounds = array<i64: 1, 4, 256>}, {transform_indices = @transform_3, window_bounds = array<i64: 1, 4, 256>}, {pipeline_mode = #tpu.pipeline_mode<synchronous>, transform_indices = @transform_4, window_bounds = array<i64: 8, 1>}, {pipeline_mode = #tpu.pipeline_mode<synchronous>, transform_indices = @transform_5, window_bounds = array<i64: 8, 53>}, {pipeline_mode = #tpu.pipeline_mode<synchronous>, transform_indices = @transform_6, window_bounds = array<i64: 8, 128>}, {pipeline_mode = #tpu.pipeline_mode<synchronous>, transform_indices = @transform_7, window_bounds = array<i64: 8, 53>}]} {
    %c0_i32 = arith.constant 0 : i32
    %0 = arith.cmpi eq, %arg0, %c0_i32 : i32
    %c0_i32_0 = arith.constant 0 : i32
    %1 = arith.cmpi eq, %arg1, %c0_i32_0 : i32
    %2 = arith.andi %0, %1 : i1
    %c1_i32 = arith.constant 1 : i32
    %3 = arith.cmpi eq, %arg0, %c1_i32 : i32
    %c0_i32_1 = arith.constant 0 : i32
    %4 = arith.cmpi eq, %arg1, %c0_i32_1 : i32
    %5 = arith.andi %3, %4 : i1
    %6 = arith.extui %2 : i1 to i32
    %c0_i32_2 = arith.constant 0 : i32
    %7 = arith.cmpi ne, %6, %c0_i32_2 : i32
    scf.if %7 {
      %cst_35 = arith.constant 0.000000e+00 : f32
      %46 = vector.broadcast %cst_35 : f32 to vector<4x128xf32>
      %c0_36 = arith.constant 0 : index
      %c0_37 = arith.constant 0 : index
      %47 = vector.load %arg11[%c0_36, %c0_37] : memref<4x128xf32, #tpu.memory_space<vmem>>, vector<4x128xf32>
      tpu.vector_store %arg11[%c0_36, %c0_37], %46 {strides = array<i32>} : memref<4x128xf32, #tpu.memory_space<vmem>>, vector<4x128xf32>,
      %cst_38 = arith.constant 0.000000e+00 : f32
      %48 = vector.broadcast %cst_38 : f32 to vector<4x128xf32>
      %c0_39 = arith.constant 0 : index
      %c0_40 = arith.constant 0 : index
      %49 = vector.load %arg12[%c0_39, %c0_40] : memref<4x128xf32, #tpu.memory_space<vmem>>, vector<4x128xf32>
      tpu.vector_store %arg12[%c0_39, %c0_40], %48 {strides = array<i32>} : memref<4x128xf32, #tpu.memory_space<vmem>>, vector<4x128xf32>,
    } else {
    }
    %cst = arith.constant 0.000000e+00 : f32
    %8 = vector.broadcast %cst : f32 to vector<4x128xf32>
    %c0 = arith.constant 0 : index
    %c0_3 = arith.constant 0 : index
    %c0_4 = arith.constant 0 : index
    %9 = vector.load %arg3[%c0, %c0_3, %c0_4] : memref<1x4x256xf32, #tpu.memory_space<vmem>>, vector<1x4x128xf32>
    %10 = vector.shape_cast %9 : vector<1x4x128xf32> to vector<4x128xf32>
    %c0_5 = arith.constant 0 : index
    %c0_6 = arith.constant 0 : index
    %c0_7 = arith.constant 0 : index
    %11 = vector.load %arg4[%c0_5, %c0_6, %c0_7] : memref<1x4x256xf32, #tpu.memory_space<vmem>>, vector<1x4x128xf32>
    %12 = vector.shape_cast %11 : vector<1x4x128xf32> to vector<4x128xf32>
    %13 = arith.subf %10, %12 : vector<4x128xf32>
    %14 = arith.mulf %13, %13 : vector<4x128xf32>
    %15 = arith.addf %8, %14 : vector<4x128xf32>
    %c0_8 = arith.constant 0 : index
    %c0_9 = arith.constant 0 : index
    %c128 = arith.constant 128 : index
    %16 = vector.load %arg3[%c0_8, %c0_9, %c128] : memref<1x4x256xf32, #tpu.memory_space<vmem>>, vector<1x4x128xf32>
    %17 = vector.shape_cast %16 : vector<1x4x128xf32> to vector<4x128xf32>
    %c0_10 = arith.constant 0 : index
    %c0_11 = arith.constant 0 : index
    %c128_12 = arith.constant 128 : index
    %18 = vector.load %arg4[%c0_10, %c0_11, %c128_12] : memref<1x4x256xf32, #tpu.memory_space<vmem>>, vector<1x4x128xf32>
    %19 = vector.shape_cast %18 : vector<1x4x128xf32> to vector<4x128xf32>
    %20 = arith.subf %17, %19 : vector<4x128xf32>
    %21 = arith.mulf %20, %20 : vector<4x128xf32>
    %22 = arith.addf %15, %21 : vector<4x128xf32>
    %c0_13 = arith.constant 0 : index
    %c0_14 = arith.constant 0 : index
    %23 = vector.load %arg11[%c0_13, %c0_14] : memref<4x128xf32, #tpu.memory_space<vmem>>, vector<4x128xf32>
    %24 = arith.addf %23, %22 : vector<4x128xf32>
    %c0_15 = arith.constant 0 : index
    %c0_16 = arith.constant 0 : index
    %25 = vector.load %arg11[%c0_15, %c0_16] : memref<4x128xf32, #tpu.memory_space<vmem>>, vector<4x128xf32>
    tpu.vector_store %arg11[%c0_15, %c0_16], %24 {strides = array<i32>} : memref<4x128xf32, #tpu.memory_space<vmem>>, vector<4x128xf32>,
    %cst_17 = arith.constant 0.000000e+00 : f32
    %26 = vector.broadcast %cst_17 : f32 to vector<4x128xf32>
    %c0_18 = arith.constant 0 : index
    %c0_19 = arith.constant 0 : index
    %c0_20 = arith.constant 0 : index
    %27 = vector.load %arg5[%c0_18, %c0_19, %c0_20] : memref<1x4x256xf32, #tpu.memory_space<vmem>>, vector<1x4x128xf32>
    %28 = vector.shape_cast %27 : vector<1x4x128xf32> to vector<4x128xf32>
    %c0_21 = arith.constant 0 : index
    %c0_22 = arith.constant 0 : index
    %c0_23 = arith.constant 0 : index
    %29 = vector.load %arg6[%c0_21, %c0_22, %c0_23] : memref<1x4x256xf32, #tpu.memory_space<vmem>>, vector<1x4x128xf32>
    %30 = vector.shape_cast %29 : vector<1x4x128xf32> to vector<4x128xf32>
    %31 = arith.subf %28, %30 : vector<4x128xf32>
    %32 = arith.mulf %31, %31 : vector<4x128xf32>
    %33 = arith.addf %26, %32 : vector<4x128xf32>
    %c0_24 = arith.constant 0 : index
    %c0_25 = arith.constant 0 : index
    %c128_26 = arith.constant 128 : index
    %34 = vector.load %arg5[%c0_24, %c0_25, %c128_26] : memref<1x4x256xf32, #tpu.memory_space<vmem>>, vector<1x4x128xf32>
    %35 = vector.shape_cast %34 : vector<1x4x128xf32> to vector<4x128xf32>
    %c0_27 = arith.constant 0 : index
    %c0_28 = arith.constant 0 : index
    %c128_29 = arith.constant 128 : index
    %36 = vector.load %arg6[%c0_27, %c0_28, %c128_29] : memref<1x4x256xf32, #tpu.memory_space<vmem>>, vector<1x4x128xf32>
    %37 = vector.shape_cast %36 : vector<1x4x128xf32> to vector<4x128xf32>
    %38 = arith.subf %35, %37 : vector<4x128xf32>
    %39 = arith.mulf %38, %38 : vector<4x128xf32>
    %40 = arith.addf %33, %39 : vector<4x128xf32>
    %c0_30 = arith.constant 0 : index
    %c0_31 = arith.constant 0 : index
    %41 = vector.load %arg12[%c0_30, %c0_31] : memref<4x128xf32, #tpu.memory_space<vmem>>, vector<4x128xf32>
    %42 = arith.addf %41, %40 : vector<4x128xf32>
    %c0_32 = arith.constant 0 : index
    %c0_33 = arith.constant 0 : index
    %43 = vector.load %arg12[%c0_32, %c0_33] : memref<4x128xf32, #tpu.memory_space<vmem>>, vector<4x128xf32>
    tpu.vector_store %arg12[%c0_32, %c0_33], %42 {strides = array<i32>} : memref<4x128xf32, #tpu.memory_space<vmem>>, vector<4x128xf32>,
    %44 = arith.extui %5 : i1 to i32
    %c0_i32_34 = arith.constant 0 : i32
    %45 = arith.cmpi ne, %44, %c0_i32_34 : i32
    scf.if %45 {
      %c0_35 = arith.constant 0 : index
      %c0_36 = arith.constant 0 : index
      %46 = vector.load %arg11[%c0_35, %c0_36] : memref<4x128xf32, #tpu.memory_space<vmem>>, vector<4x128xf32>
      %cst_37 = arith.constant dense<0.000000e+00> : vector<4xf32>
      %47 = vector.multi_reduction <add>, %46, %cst_37 [1] : vector<4x128xf32> to vector<4xf32>
      %48 = vector.shape_cast %47 : vector<4xf32> to vector<4x1xf32>
      %cst_38 = arith.constant 0.001953125 : f32
      %49 = vector.broadcast %cst_38 : f32 to vector<4x1xf32>
      %50 = arith.mulf %48, %49 : vector<4x1xf32>
      %c0_39 = arith.constant 0 : index
      %c0_40 = arith.constant 0 : index
      %51 = vector.load %arg12[%c0_39, %c0_40] : memref<4x128xf32, #tpu.memory_space<vmem>>, vector<4x128xf32>
      %cst_41 = arith.constant dense<0.000000e+00> : vector<4xf32>
      %52 = vector.multi_reduction <add>, %51, %cst_41 [1] : vector<4x128xf32> to vector<4xf32>
      %53 = vector.shape_cast %52 : vector<4xf32> to vector<4x1xf32>
      %cst_42 = arith.constant 0.001953125 : f32
      %54 = vector.broadcast %cst_42 : f32 to vector<4x1xf32>
      %55 = arith.mulf %53, %54 : vector<4x1xf32>
      %56 = tpu.concatenate %50, %55 in 0 : vector<4x1xf32>, vector<4x1xf32> -> vector<8x1xf32>
      %c0_43 = arith.constant 0 : index
      %57 = memref.load %arg2[%c0_43] : memref<1xi32, #tpu.memory_space<smem>>
      %c0_44 = arith.constant 0 : index
      %c0_45 = arith.constant 0 : index
      %58 = vector.load %arg8[%c0_44, %c0_45] : memref<8x53xf32, #tpu.memory_space<vmem>>, vector<8x53xf32>
      %59 = tpu.iota {dimensions = array<i32: 1>} : vector<8x53xi32>
      %60 = vector.broadcast %57 : i32 to vector<8x53xi32>
      %61 = arith.cmpi eq, %59, %60 : vector<8x53xi32>
      %62 = vector.shape_cast %56 : vector<8x1xf32> to vector<8x1xf32>
      %63 = vector.broadcast %62 : vector<8x1xf32> to vector<8x53xf32>
      %64 = arith.select %61, %63, %58 : vector<8x53xi1>, vector<8x53xf32>
      %c0_46 = arith.constant 0 : index
      %c0_47 = arith.constant 0 : index
      %65 = vector.load %arg10[%c0_46, %c0_47] : memref<8x53xf32, #tpu.memory_space<vmem>>, vector<8x53xf32>
      tpu.vector_store %arg10[%c0_46, %c0_47], %64 {strides = array<i32>} : memref<8x53xf32, #tpu.memory_space<vmem>>, vector<8x53xf32>,
      %cst_48 = arith.constant dense<0.000000e+00> : vector<8xf32>
      %66 = vector.multi_reduction <add>, %64, %cst_48 [1] : vector<8x53xf32> to vector<8xf32>
      %67 = vector.shape_cast %66 : vector<8xf32> to vector<8x1xf32>
      %cst_49 = arith.constant 0.0188679248 : f32
      %68 = vector.broadcast %cst_49 : f32 to vector<8x1xf32>
      %69 = arith.mulf %67, %68 : vector<8x1xf32>
      %70 = vector.broadcast %69 : vector<8x1xf32> to vector<8x53xf32>
      %71 = arith.subf %64, %70 : vector<8x53xf32>
      %72 = arith.mulf %71, %71 : vector<8x53xf32>
      %cst_50 = arith.constant dense<0.000000e+00> : vector<8xf32>
      %73 = vector.multi_reduction <add>, %72, %cst_50 [1] : vector<8x53xf32> to vector<8xf32>
      %74 = vector.shape_cast %73 : vector<8xf32> to vector<8x1xf32>
      %cst_51 = arith.constant 0.0188679248 : f32
      %75 = vector.broadcast %cst_51 : f32 to vector<8x1xf32>
      %76 = arith.mulf %74, %75 : vector<8x1xf32>
      %77 = math.sqrt %76 : vector<8x1xf32>
      %78 = arith.cmpf one, %77, %77 : vector<8x1xf32>
      %cst_52 = arith.constant 1.000000e+01 : f32
      %79 = vector.broadcast %cst_52 : f32 to vector<8x1xf32>
      %80 = arith.select %78, %79, %77 : vector<8x1xi1>, vector<8x1xf32>
      %cst_53 = arith.constant 0.00999999977 : f32
      %cst_54 = arith.constant 1.000000e+02 : f32
      %81 = vector.broadcast %cst_53 : f32 to vector<8x1xf32>
      %82 = arith.maximumf %81, %80 : vector<8x1xf32>
      %83 = vector.broadcast %cst_54 : f32 to vector<8x1xf32>
      %84 = arith.minimumf %83, %82 : vector<8x1xf32>
      %cst_55 = arith.constant 1.000000e+00 : f32
      %85 = vector.broadcast %cst_55 : f32 to vector<8x1xf32>
      %86 = arith.divf %85, %84 : vector<8x1xf32>
      %87 = vector.shape_cast %86 : vector<8x1xf32> to vector<1x8x1xf32>
      %cst_56 = arith.constant dense<0.000000e+00> : vector<1xf32>
      %88 = vector.multi_reduction <add>, %87, %cst_56 [1, 2] : vector<1x8x1xf32> to vector<1xf32>
      %89 = vector.shape_cast %88 : vector<1xf32> to vector<1x1x1xf32>
      %90 = vector.extract %89[0, 0, 0] : f32 from vector<1x1x1xf32>
      %cst_57 = arith.constant 1.250000e-01 : f32
      %91 = arith.mulf %90, %cst_57 : f32
      %92 = vector.broadcast %91 : f32 to vector<8x1xf32>
      %93 = arith.mulf %84, %92 : vector<8x1xf32>
      %c0_58 = arith.constant 0 : index
      %c0_59 = arith.constant 0 : index
      %94 = vector.load %arg7[%c0_58, %c0_59] : memref<8x1xf32, #tpu.memory_space<vmem>>, vector<8x1xf32>
      %95 = arith.mulf %94, %56 : vector<8x1xf32>
      %96 = arith.divf %95, %93 : vector<8x1xf32>
      %97 = vector.shape_cast %96 : vector<8x1xf32> to vector<1x8x1xf32>
      %cst_60 = arith.constant dense<0.000000e+00> : vector<1xf32>
      %98 = vector.multi_reduction <add>, %97, %cst_60 [1, 2] : vector<1x8x1xf32> to vector<1xf32>
      %99 = vector.shape_cast %98 : vector<1xf32> to vector<1x1x1xf32>
      %100 = vector.extract %99[0, 0, 0] : f32 from vector<1x1x1xf32>
      %101 = tpu.iota {dimensions = array<i32: 1>} : vector<8x128xi32>
      %c0_i32_61 = arith.constant 0 : i32
      %102 = vector.broadcast %c0_i32_61 : i32 to vector<8x128xi32>
      %103 = arith.cmpi eq, %101, %102 : vector<8x128xi32>
      %cst_62 = arith.constant 0.000000e+00 : f32
      %104 = vector.shape_cast %56 : vector<8x1xf32> to vector<8x1xf32>
      %105 = vector.broadcast %104 : vector<8x1xf32> to vector<8x128xf32>
      %106 = vector.broadcast %cst_62 : f32 to vector<8x128xf32>
      %107 = arith.select %103, %105, %106 : vector<8x128xi1>, vector<8x128xf32>
      %c1_i32_63 = arith.constant 1 : i32
      %108 = vector.broadcast %c1_i32_63 : i32 to vector<8x128xi32>
      %109 = arith.cmpi eq, %101, %108 : vector<8x128xi32>
      %110 = vector.shape_cast %93 : vector<8x1xf32> to vector<8x1xf32>
      %111 = vector.broadcast %110 : vector<8x1xf32> to vector<8x128xf32>
      %112 = arith.select %109, %111, %107 : vector<8x128xi1>, vector<8x128xf32>
      %c2_i32 = arith.constant 2 : i32
      %113 = vector.broadcast %c2_i32 : i32 to vector<8x128xi32>
      %114 = arith.cmpi eq, %101, %113 : vector<8x128xi32>
      %115 = vector.broadcast %100 : f32 to vector<8x128xf32>
      %116 = arith.select %114, %115, %112 : vector<8x128xi1>, vector<8x128xf32>
      %c0_64 = arith.constant 0 : index
      %c0_65 = arith.constant 0 : index
      %117 = vector.load %arg9[%c0_64, %c0_65] : memref<8x128xf32, #tpu.memory_space<vmem>>, vector<8x128xf32>
      tpu.vector_store %arg9[%c0_64, %c0_65], %116 {strides = array<i32>} : memref<8x128xf32, #tpu.memory_space<vmem>>, vector<8x128xf32>,
    } else {
    }
    return
  }
  func.func @transform_0(%arg0: i32, %arg1: i32, %arg2: memref<1xi32, #tpu.memory_space<smem>>) -> (i32, i32, i32) {
    %c0_i32 = arith.constant 0 : i32
    %c0_i32_0 = arith.constant 0 : i32
    return %arg0, %c0_i32, %arg1 : i32, i32, i32
  }
  func.func @transform_1(%arg0: i32, %arg1: i32, %arg2: memref<1xi32, #tpu.memory_space<smem>>) -> (i32, i32, i32) {
    %c0_i32 = arith.constant 0 : i32
    %c0_i32_0 = arith.constant 0 : i32
    return %arg0, %c0_i32, %arg1 : i32, i32, i32
  }
  func.func @transform_2(%arg0: i32, %arg1: i32, %arg2: memref<1xi32, #tpu.memory_space<smem>>) -> (i32, i32, i32) {
    %c0_i32 = arith.constant 0 : i32
    %c0_i32_0 = arith.constant 0 : i32
    return %arg0, %c0_i32, %arg1 : i32, i32, i32
  }
  func.func @transform_3(%arg0: i32, %arg1: i32, %arg2: memref<1xi32, #tpu.memory_space<smem>>) -> (i32, i32, i32) {
    %c0_i32 = arith.constant 0 : i32
    %c0_i32_0 = arith.constant 0 : i32
    return %arg0, %c0_i32, %arg1 : i32, i32, i32
  }
  func.func @transform_4(%arg0: i32, %arg1: i32, %arg2: memref<1xi32, #tpu.memory_space<smem>>) -> (i32, i32) {
    %c0_i32 = arith.constant 0 : i32
    %c0_i32_0 = arith.constant 0 : i32
    %c0_i32_1 = arith.constant 0 : i32
    return %c0_i32, %c0_i32_0 : i32, i32
  }
  func.func @transform_5(%arg0: i32, %arg1: i32, %arg2: memref<1xi32, #tpu.memory_space<smem>>) -> (i32, i32) {
    %c0_i32 = arith.constant 0 : i32
    %c0_i32_0 = arith.constant 0 : i32
    %c0_i32_1 = arith.constant 0 : i32
    return %c0_i32, %c0_i32_0 : i32, i32
  }
  func.func @transform_6(%arg0: i32, %arg1: i32, %arg2: memref<1xi32, #tpu.memory_space<smem>>) -> (i32, i32) {
    %c0_i32 = arith.constant 0 : i32
    %c0_i32_0 = arith.constant 0 : i32
    %c0_i32_1 = arith.constant 0 : i32
    return %c0_i32, %c0_i32_0 : i32, i32
  }
  func.func @transform_7(%arg0: i32, %arg1: i32, %arg2: memref<1xi32, #tpu.memory_space<smem>>) -> (i32, i32) {
    %c0_i32 = arith.constant 0 : i32
    %c0_i32_0 = arith.constant 0 : i32
    %c0_i32_1 = arith.constant 0 : i32
    return %c0_i32, %c0_i32_0 : i32, i32
  }
}

</mosaic_0001>

<bundles_post_ra>
// kernel: tpu_custom_call.1
= control target key start
LH: loop header
LB: loop body
LE: loop exit
PB: predicated region body
PF: predicated region fallthrough
CT: control target
= control target key end

     0   :  { %s1376_s0 = inlined_call_operand.<no memory space> [shape: s32[1], index: 0, kind: input, shape index: {}]   ;;  %s1377_s1 = inlined_call_operand.hbm [shape: f32[2,4,256], index: 1, kind: input, shape index: {}]   ;;  %s1378_s2 = inlined_call_operand.hbm [shape: f32[2,4,256], index: 2, kind: input, shape index: {}]   ;;  %s1379_s3 = inlined_call_operand.hbm [shape: f32[2,4,256], index: 3, kind: input, shape index: {}]   ;;  %s1380_s4 = inlined_call_operand.hbm [shape: f32[2,4,256], index: 4, kind: input, shape index: {}]   ;;  %s1381_s5 = inlined_call_operand.vmem [shape: f32[8,1], index: 5, kind: input, shape index: {}]   ;;  %s1382_s6 = inlined_call_operand.vmem [shape: f32[8,53], index: 6, kind: input, shape index: {}]   ;;  %s1383_s7 = inlined_call_operand.hbm [shape: f32[8,128], index: 7, kind: output, shape index: {0}]   ;;  %s1384_s8 = inlined_call_operand.hbm [shape: f32[8,53], index: 8, kind: output, shape index: {1}]  }
   0x1   :  { %1389 = sst [smem:[#allocation27_spill]] %s1377_s1 }
   0x2   :  { %1390 = sst [smem:[#allocation28_spill]] %s1378_s2 }
   0x3   :  { %14 = sst [smem:[#allocation5]] %s1376_s0 }
   0x4   :  { %15 = vsyncpa [#allocation7], 0 }
   0x5   :  { %17 = vsyncpa [#allocation7 + $0x1], 0 }
   0x6   :  { %18 = vsyncpa [#allocation10], 0 }
   0x7   :  { %20 = vsyncpa [#allocation10 + $0x1], 0 }
   0x8   :  { %21 = vsyncpa [#allocation13], 0 }
   0x9   :  { %23 = vsyncpa [#allocation13 + $0x1], 0 }
   0xa   :  { %24 = vsyncpa [#allocation8], 0 }
   0xb   :  { %25 = vsyncpa [#allocation16], 0  ;;  %s1191_s29 = smov 0   ;;  %s1193_s30 = smov 0  }
   0xc   :  { %s1195_s9 = smov 0   ;;  %s1197_s10 = smov 0  }
   0xd   :  { %s1199_s11 = smov 0   ;;  %s1201_s12 = smov 0  }
   0xe LB: > { %1391 = sst [smem:[#allocation22_spill]] %s1125_s9  ;;  %s1220_s0 = sadd.s32 4294967295, %s1137_s12   ;;  %s1137_s12 = sphi %s1201_s12, %s31_s12   ;;  %s1133_s11 = sphi %s1199_s11, %s1405_s11   ;;  %s1129_s10 = sphi %s1197_s10, %s1404_s10   ;;  %s1125_s9 = sphi %s1195_s9, %s1403_s9   ;;  %s1121_s30 = sphi %s1193_s30, %s1407_s30   ;;  %s1117_s29 = sphi %s1191_s29, %s1406_s29  }
   0xf   : > { %1392 = sst [smem:[#allocation23_spill]] %s1133_s11  ;;  %s43_s13 = sadd.s32 1, %s1133_s11 }
  0x10   : > { %1393 = sst [smem:[#allocation24_spill]] %s1137_s12  ;;  %p45_p0 = scmp.ge.s32.totalorder %s43_s13, 2 }
  0x11   : > { %s52_s14 = sadd.s32 1, %s1125_s9  ;;  %p59_p1 = scmp.ne.s32.totalorder %s1125_s9, %s1121_s30 }
  0x12   : > { %p60_p2 = scmp.eq.s32.totalorder %s1137_s12, 0  ;;  %s1409_s13 = smov (%p45_p0, %s43_s13), 0 }
  0x13   : > { %1394 = sst [smem:[#allocation25_spill]] %s1409_s13  ;;  %p65_p4 = scmp.ne.s32.totalorder %s1121_s30, %s1117_s29 }
  0x14   : > { %p61_p3 = por %p60_p2, %p59_p1  ;;  %s47_s15 = ssub.s32 %s1133_s11, %s1409_s13 }
  0x15   : > { %p66_p5 = scmp.eq.s32.totalorder %s1220_s0, 0  ;;  %p50_p6 = scmp.eq.s32.totalorder %s47_s15, 0 }
  0x16   : > { %p830_p8 = scmp.lt.s32.totalorder %s1137_s12, 2  ;;  %s1242_s18 = sand.u32 1, %s1125_s9  }
  0x17   : > { %p1233_p7 = por %p66_p5, %p65_p4  ;;  %s1245_s19 = sshll.u32 %s1133_s11, 3 }
  0x18   : > { %s1239_s17 = scalar_select %p50_p6, %s1125_s9, %s52_s14  }
  0x19   : > { %s1248_s20 = sshll.u32 %s1242_s18, 3  ;;  %p1250_p9 = pnand %p830_p8, %p61_p3 }
  0x1a   : > { %1396 = sst [smem:[#allocation26_spill]] %s1239_s17  ;;  %s285_s22 = sand.u32 1, %s1137_s12  }
  0x1b   : > { %s1398_s2 = sld [smem:[#allocation28_spill]]  ;;  %s289_s26 = scalar_lea.vmem [#allocation9], %s1248_s20 }
  0x1c   : > { %s300_s27 = sshll.u32 %s289_s26, 4  ;;  %p778_p10 = scmp.ge.s32.totalorder %s1137_s12, 1  ;;  %s301_s27 = int_to_ptr.vmem [resolvable:$true] %s300_s27 }
  0x1d   : > { %s286_s29 = scalar_lea.sflag [#allocation10], %s285_s22  ;;  %p349_p11 = scmp.lt.s32.totalorder %s1137_s12, 3 }
  0x1e   : > { %s1400_s1 = sld [smem:[#allocation27_spill]]  ;;  %s264_s22 = scalar_lea.sflag [#allocation7], %s1242_s18 }
  0x1f   : > { %p1264_p12 = pnand %p778_p10, %p349_p11  ;;  %s318_s13 = scalar_lea.hbm %s1379_s3, %s1245_s19 }
  0x20   : > { %s311_s11 = scalar_lea.vmem [#allocation11], %s1248_s20  ;;  %s320_s15 = sshll.u32 %s318_s13, 4  ;;  %s321_s15 = int_to_ptr.hbm [resolvable:$true] %s320_s15 }
  0x21   : > { %s296_s25 = scalar_lea.hbm %s1398_s2, %s1245_s19  ;;  %s322_s17 = sshll.u32 %s311_s11, 4  ;;  %s323_s17 = int_to_ptr.vmem [resolvable:$true] %s322_s17 }
  0x22   : > { %s298_s28 = sshll.u32 %s296_s25, 4  ;;  %s267_s25 = scalar_lea.vmem [#allocation6], %s1248_s20  ;;  %s299_s28 = int_to_ptr.hbm [resolvable:$true] %s298_s28 }
  0x23   : > { %823 = dma.hbm_to_vmem [thread:$0]  (!%p1250_p9), %s299_s28, 128, %s301_s27, %s286_s29  }
  0x24   : > { %s274_s24 = scalar_lea.hbm %s1400_s1, %s1245_s19  ;;  %s278_s26 = sshll.u32 %s267_s25, 4  ;;  %s279_s26 = int_to_ptr.vmem [resolvable:$true] %s278_s26 }
  0x25   : > { %s276_s2 = sshll.u32 %s274_s24, 4  ;;  %s340_s25 = scalar_lea.hbm %s1380_s4, %s1245_s19  ;;  %s277_s2 = int_to_ptr.hbm [resolvable:$true] %s276_s2 }
  0x26   : > { %820 = dma.hbm_to_vmem [thread:$0]  (!%p1250_p9), %s277_s2, 128, %s279_s26, %s264_s22  }
  0x27   : > { %826 = dma.hbm_to_vmem [thread:$0]  (!%p1250_p9), %s321_s15, 128, %s323_s17, %s286_s29  }
  0x28   : > { %s342_s1 = sshll.u32 %s340_s25, 4  ;;  %s333_s9 = scalar_lea.vmem [#allocation12], %s1248_s20  ;;  %s343_s1 = int_to_ptr.hbm [resolvable:$true] %s342_s1 }
  0x29   : > { %s344_s12 = sshll.u32 %s333_s9, 4  ;;  %s330_s2 = scalar_lea.sflag [#allocation13], %s1242_s18  ;;  %s345_s12 = int_to_ptr.vmem [resolvable:$true] %s344_s12 }
  0x2a   : > { %829 = dma.hbm_to_vmem [thread:$0]  (!%p1250_p9), %s343_s1, 128, %s345_s12, %s330_s2  }
  0x2b   : > { %353 = sbr.rel (%p1264_p12) target bundleno = 1006 (0x3ee), region = 44  ;;  %s355_s11 = sand.u32 (!%p1264_p12), 1, %s1121_s30  }
  0x2c   : > { %s1294_s13 = sshll.u32 (!%p1264_p12), %s355_s11, 3  ;;  %s356_s17 = scalar_lea.sflag (!%p1264_p12), [#allocation7], %s355_s11 }
  0x2d   : > { %s359_s29 = scalar_lea.vmem (!%p1264_p12), [#allocation6], %s1294_s13 }
  0x30   : > { %1096 = dma.done.wait (%p1233_p7), %s356_s17, 128  }
  0x31   : > { %1098 = vsyncadd (%p1233_p7), %s356_s17, 4294967168  ;;  %s365_s1 = sand.u32 1, %s1220_s0   ;;  %s369_s12 = scalar_lea.vmem [#allocation9], %s1294_s13 }
  0x32   : > { %s366_s9 = scalar_lea.sflag [#allocation10], %s365_s1 }
  0x33   : > { %1100 = dma.done.wait (%p1233_p7), %s366_s9, 256  }
  0x34   : > { %1102 = vsyncadd (%p1233_p7), %s366_s9, 4294967040  ;;  %s379_s18 = scalar_lea.vmem [#allocation11], %s1294_s13  ;;  %s386_s19 = scalar_lea.sflag [#allocation13], %s355_s11 }
  0x35   : > { %s389_s20 = scalar_lea.vmem [#allocation12], %s1294_s13 }
  0x36   : > { %1104 = dma.done.wait (%p1233_p7), %s386_s19, 128  }
  0x37   : > { %1106 = vsyncadd (%p1233_p7), %s386_s19, 4294967168  ;;  %p435_p13 = scmp.eq.s32.totalorder %s1129_s10, 0  ;;  %p439_p0 = scmp.eq.s32.totalorder %s1129_s10, 1 }
  0x38   : > { %v1139_v0 = vmov (%p435_p13), 0.0  }
  0x39   : > { %443 = sbr.rel (!%p435_p13) target bundleno = 62 (0x3e), region = 64  ;;  %444 = vst [vmem:[#allocation2] sm:$0xf] (%p435_p13), %v1139_v0 }
  0x3a   : > { %445 = vst [vmem:[#allocation3] sm:$0xf] (%p435_p13), %v1139_v0 }
  0x3e PF: > { %v446_v1 = vld [vmem:[%s359_s29] sm:$0xf]  ;;  %v447_v2 = vld [vmem:[%s369_s12] sm:$0xf]  ;;  %v451_v3 = vld [vmem:[%s359_s29 + $0x4] sm:$0xf]  ;;  %v491_v34 = vlaneseq (%p439_p0) }
  0x3f   : > { %v448_v4 = vsub.f32 %v446_v1, %v447_v2  ;;  %v452_v5 = vld [vmem:[%s369_s12 + $0x4] sm:$0xf]  ;;  %v459_v6 = vld [vmem:[%s379_s18] sm:$0xf]  ;;  %v460_v8 = vld [vmem:[%s389_s20] sm:$0xf] }
  0x40   : > { %v453_v7 = vsub.f32 %v451_v3, %v452_v5  ;;  %v464_v9 = vld [vmem:[%s379_s18 + $0x4] sm:$0xf]  ;;  %v465_v10 = vld [vmem:[%s389_s20 + $0x4] sm:$0xf]  ;;  %v461_v12 = vsub.f32 %v459_v6, %v460_v8  ;;  %v456_v15 = vld [vmem:[#allocation2] sm:$0xf] }
  0x41   : > { %v449_v11 = vmul.f32 %v448_v4, %v448_v4  ;;  %v466_v13 = vsub.f32 %v464_v9, %v465_v10  ;;  %v469_v19 = vld [vmem:[#allocation3] sm:$0xf]  ;;  %vm475_vm0 = vcmask (%p439_p0), 1043456   ;;  %v1140_v27 = vmov (%p439_p0), 0   ;;  %s489_s10 = sld [smem:[#allocation5]] (%p439_p0) }
  0x42   : > { %v454_v14 = vmul.f32 %v453_v7, %v453_v7  ;;  %v462_v16 = vmul.f32 %v461_v12, %v461_v12  ;;  %887 = vset.pattern.permute.xlu1 (%p439_p0), %v1140_v27  ;;  %888 = vset.pattern.permute.xlu0 (%p439_p0), %v1140_v27  ;;  %v1320_v35 = vand.u32 (%p439_p0), 127, %v491_v34  ;;  %v490_v37 = vld [vmem:[%s1382_s6] sm:$0xff] (%p439_p0)  ;;  %vm501_vm2 = vcmask (%p439_p0), 433152  }
  0x43   : > { %v467_v17 = vmul.f32 %v466_v13, %v466_v13  ;;  %vm544_vm9 = vcmask (%p439_p0), 7168  }
  0x44   : > { %v455_v18 = vadd.f32 %v454_v14, %v449_v11  ;;  %vm585_vm15 = vcmp.eq.s32.totalorder (%p439_p0), %v1320_v35, 0 }
  0x45   : > { %v468_v20 = vadd.f32 %v467_v17, %v462_v16  ;;  %473 = sbr.rel (!%p439_p0) target bundleno = 996 (0x3e4), region = 68 }
  0x46   : > { %v457_v21 = vadd.f32 %v456_v15, %v455_v18 }
  0x47   : > { %v470_v22 = vadd.f32 %v469_v19, %v468_v20  ;;  %v493_v36 = vstv (%p439_p0), %s489_s10 }
  0x48   : > { %458 = vst [vmem:[#allocation2] sm:$0xf] %v457_v21  ;;  %vm494_vm1 = vcmp.eq.s32.totalorder (%p439_p0), %v1320_v35, %v493_v36 }
  0x49   : > { %471 = vst [vmem:[#allocation3] sm:$0xf] %v470_v22 }
  0x4f   : > { %v474_v25 = vld [vmem:[#allocation2] sm:$0xf] }
  0x50   : > { %v480_v23 = vld [vmem:[#allocation3] sm:$0xf]  ;;  %v476_v26 = vsel %vm475_vm0, %v474_v25, 0.0 }
  0x51   : > { %v481_v24 = vsel %vm475_vm0, %v480_v23, 0.0  ;;  %v558_v23 = vld [vmem:[%s1381_s5] sm:$0xff] }
  0x52   : > { %482 = vadd.xlane.f32.xlu0 %v481_v24 }
  0x5a   : > { %477 = vadd.xlane.f32.xlu0 %v476_v26 }
  0xc5   : > { %v483_v28 = vpop.xlane.xlu0 %482 }
  0xc6   : > { %v484_v29 = vmul.f32 0.001953125, %v483_v28 }
  0xc8   : > { %v486_v31 = vrot.slane %v484_v29, 4 }
  0xcd   : > { %v478_v30 = vpop.xlane.xlu0 %477 }
  0xce   : > { %v479_v32 = vmul.f32 0.001953125, %v478_v30 }
  0xd0   : > { %v1317_v33 = vsel %vm475_vm0, %v479_v32, %v486_v31  ;;  %vm587_vm0 = vcmp.eq.s32.totalorder %v1320_v35, 1 }
  0xd1   : > { %497 = vperm.xlu1 %887, %v1317_v33   ;;  %v559_v26 = vmul.f32 %v558_v23, %v1317_v33 }
 0x143   : > { %v1326_v38 = vpop.permute.xlu1 %497 }
 0x144   : > { %v500_v39 = vsel %vm494_vm1, %v1326_v38, %v490_v37  ;;  %vm589_vm1 = vcmp.eq.s32.totalorder %v1320_v35, 2  ;;  %v586_v33 = vsel %vm585_vm15, %v1326_v38, 0.0 }
 0x145   : > { %v503_v40 = vsel %vm501_vm2, %v500_v39, 0.0  ;;  %502 = vst.msk [vmem:[#allocation15] sm:$0xff] %vm501_vm2, %v500_v39 }
 0x146   : > { %504 = vadd.xlane.f32.xlu1 %v503_v40 }
 0x1b9   : > { %v505_v41 = vpop.xlane.xlu1 %504 }
 0x1ba   : > { %v506_v42 = vmul.f32 0.018867925, %v505_v41 }
 0x1bc   : > { %v507_v43 = vsub.f32 %v500_v39, %v506_v42 }
 0x1be   : > { %v508_v44 = vmul.f32 %v507_v43, %v507_v43 }
 0x1c0   : > { %v509_v45 = vsel %vm501_vm2, %v508_v44, 0.0 }
 0x1c1   : > { %510 = vadd.xlane.f32.xlu2 %v509_v45 }
 0x234   : > { %v511_v46 = vpop.xlane.xlu2 %510 }
 0x235   : > { %v512_v47 = vmul.f32 0.018867925, %v511_v46 }
 0x237   : > { %889 = vrsqrt.f32 %v512_v47  ;;  %vm520_vm3 = vcmp.eq.f32.partialorder %v512_v47, inf  ;;  %v523_v55 = vand.u32 2147483648, %v512_v47  ;;  %vm522_vm4 = vcmp.eq.f32.partialorder %v512_v47, 0.0 }
 0x23d   : > { %v890_v48 = vpop.eup %889 }
 0x23e   : > { %v514_v49 = vmul.f32 %v890_v48, %v512_v47 }
 0x240   : > { %v515_v50 = vmul.f32 %v890_v48, %v514_v49 }
 0x242   : > { %v516_v51 = vmul.f32 0.5, %v515_v50 }
 0x244   : > { %v517_v52 = vsub.f32 1.5, %v516_v51 }
 0x246   : > { %v518_v53 = vmul.f32 %v890_v48, %v517_v52 }
 0x248   : > { %v519_v54 = vmul.f32 %v518_v53, %v512_v47 }
 0x24a   : > { %v521_v56 = vsel %vm520_vm3, %v512_v47, %v519_v54 }
 0x24b   : > { %v524_v57 = vsel %vm522_vm4, %v523_v55, %v521_v56 }
 0x24c   : > { %vm525_vm5 = vcmp.ne.f32.partialorder %v524_v57, %v524_v57 }
 0x24d   : > { %v526_v58 = vsel %vm525_vm5, 10.0, %v524_v57 }
 0x24e   : > { %v527_v59 = vmax.f32 %v526_v58, 0.01 }
 0x250   : > { %v528_v60 = vmin.f32 %v527_v59, 100.0 }
 0x252   : > { %891 = vrcp.f32 %v528_v60  ;;  %v540_v0 = vand.u32 2147483648, %v528_v60  ;;  %v538_v2 = vand.u32 2147483647, %v528_v60  ;;  %vm534_vm7 = vweird.f32 %v528_v60 }
 0x254   : > { %v541_v4 = vor.u32 1.1754944e-38, %v540_v0  ;;  %vm539_vm10 = vcmp.eq.f32.partialorder %v538_v2, 8.507059e+37 }
 0x258   : > { %v892_v61 = vpop.eup %891 }
 0x259   : > { %v530_v62 = vmul.f32 %v892_v61, %v528_v60  ;;  %vm535_vm6 = vweird.f32 %v892_v61 }
 0x25a   : > { %vm536_vm8 = vmor %vm534_vm7, %vm535_vm6 }
 0x25b   : > { %v531_v63 = vsub.f32 1.0, %v530_v62 }
 0x25d   : > { %v532_v1 = vmul.f32 %v892_v61, %v531_v63 }
 0x25f   : > { %v533_v3 = vadd.f32 %v892_v61, %v532_v1 }
 0x261   : > { %v537_v5 = vsel %vm536_vm8, %v892_v61, %v533_v3 }
 0x262   : > { %v542_v6 = vsel %vm539_vm10, %v541_v4, %v537_v5 }
 0x263   : > { %v545_v7 = vsel %vm544_vm9, %v542_v6, 0.0 }
 0x264   : > { %546 = vadd.xlane.f32.xlu2 %v545_v7 }
 0x2d7   : > { %v547_v8 = vpop.xlane.xlu2 %546 }
 0x2d8   : > { %v548_v9 = vrot.slane %v547_v8, 4 }
 0x2da   : > { %v549_v10 = vadd.f32 %v548_v9, %v547_v8 }
 0x2dc   : > { %v550_v11 = vrot.slane %v549_v10, 2 }
 0x2de   : > { %v551_v12 = vadd.f32 %v550_v11, %v549_v10 }
 0x2e0   : > { %v552_v13 = vrot.slane %v551_v12, 1 }
 0x2e2   : > { %v553_v14 = vadd.f32 %v552_v13, %v551_v12 }
 0x2e4   : > { %797 = vpush %v553_v14 }
 0x315   : > { %s798_s14 = spop %797 }
 0x316   : > { %s555_s26 = smul.f32 0.125, %s798_s14 }
 0x318   : > { %v556_v15 = vstv %s555_s26 }
 0x319   : > { %v557_v16 = vmul.f32 %v556_v15, %v528_v60 }
 0x31b   : > { %893 = vrcp.f32 %v557_v16  ;;  %v571_v20 = vand.u32 2147483648, %v557_v16  ;;  %v569_v22 = vand.u32 2147483647, %v557_v16  ;;  %vm565_vm12 = vweird.f32 %v557_v16 }
 0x31c   : > { %v588_v41 = vsel %vm587_vm0, %v557_v16, %v586_v33 }
 0x31d   : > { %v572_v25 = vor.u32 1.1754944e-38, %v571_v20  ;;  %vm570_vm14 = vcmp.eq.f32.partialorder %v569_v22, 8.507059e+37 }
 0x321   : > { %v894_v17 = vpop.eup %893 }
 0x322   : > { %v561_v18 = vmul.f32 %v894_v17, %v557_v16  ;;  %vm566_vm11 = vweird.f32 %v894_v17 }
 0x323   : > { %vm567_vm13 = vmor %vm565_vm12, %vm566_vm11 }
 0x324   : > { %v562_v19 = vsub.f32 1.0, %v561_v18 }
 0x326   : > { %v563_v21 = vmul.f32 %v894_v17, %v562_v19 }
 0x328   : > { %v564_v24 = vadd.f32 %v894_v17, %v563_v21 }
 0x32a   : > { %v568_v27 = vsel %vm567_vm13, %v894_v17, %v564_v24 }
 0x32b   : > { %v573_v28 = vsel %vm570_vm14, %v572_v25, %v568_v27 }
 0x32c   : > { %v574_v29 = vmul.f32 %v573_v28, %v559_v26 }
 0x32e   : > { %v575_v30 = vsel %vm544_vm9, %v574_v29, 0.0 }
 0x32f   : > { %576 = vadd.xlane.f32.xlu0 %v575_v30 }
 0x3a2   : > { %v577_v31 = vpop.xlane.xlu0 %576 }
 0x3a3   : > { %v578_v32 = vrot.slane %v577_v31, 4 }
 0x3a5   : > { %v579_v34 = vadd.f32 %v578_v32, %v577_v31 }
 0x3a7   : > { %v580_v36 = vrot.slane %v579_v34, 2 }
 0x3a9   : > { %v581_v37 = vadd.f32 %v580_v36, %v579_v34 }
 0x3ab   : > { %v582_v39 = vrot.slane %v581_v37, 1 }
 0x3ad   : > { %v583_v40 = vadd.f32 %v582_v39, %v581_v37 }
 0x3af   : > { %799 = vpush %v583_v40 }
 0x3e0   : > { %s800_s28 = spop %799 }
 0x3e1   : > { %v590_v42 = vstv %s800_s28 }
 0x3e2   : > { %v591_v43 = vsel %vm589_vm1, %v590_v42, %v588_v41 }
 0x3e3   : > { %592 = vst [vmem:[#allocation14] sm:$0xff] %v591_v43 }
 0x3e4 PF: > { %p831_p1 = scmp.eq.s32.totalorder %s1220_s0, 1  ;;  %s601_s24 = sshll.u32 %s1383_s7, 4  ;;  %s602_s24 = int_to_ptr.hbm [resolvable:$true] %s601_s24 }
 0x3e5   : > { %s1141_s25 = smov [#allocation14]   ;;  %s1142_s11 = smov [#allocation15]  }
 0x3e6   : > { %s599_s2 = sshll.u32 %s1141_s25, 4  ;;  %s611_s13 = sshll.u32 %s1142_s11, 4  ;;  %s600_s2 = int_to_ptr.vmem [resolvable:$true] %s599_s2  ;;  %s612_s13 = int_to_ptr.vmem [resolvable:$true] %s611_s13 }
 0x3e7   : > { %810 = dma.vmem_to_hbm [thread:$0]  (%p831_p1), %s600_s2, 128, %s602_s24, [#allocation8]  }
 0x3e8   : > { %s613_s1 = sshll.u32 %s1384_s8, 4  ;;  %s614_s1 = int_to_ptr.hbm [resolvable:$true] %s613_s1 }
 0x3e9   : > { %812 = dma.vmem_to_hbm [thread:$0]  (%p831_p1), %s612_s13, 128, %s614_s1, [#allocation16]  }
 0x3ea   : > { %1108 = dma.done.wait (%p831_p1), [#allocation8], 128  }
 0x3eb   : > { %1110 = vsyncadd (%p831_p1), [#allocation8], 4294967168 }
 0x3ec   : > { %1112 = dma.done.wait (%p831_p1), [#allocation16], 128  }
 0x3ed   : > { %1114 = vsyncadd (%p831_p1), [#allocation16], 4294967168 }
 0x3ee PF: > { %s1401_s9 = sld [smem:[#allocation24_spill]]  ;;  %s1406_s29 = smov %s1121_s30 }
 0x3ef   : > { %s1402_s18 = sld [smem:[#allocation22_spill]] }
 0x3f0   : > { %s1404_s10 = sld [smem:[#allocation23_spill]] }
 0x3f1   : > { %s1405_s11 = sld [smem:[#allocation25_spill]] }
 0x3f4   : > { %s31_s12 = sadd.s32 1, %s1401_s9   ;;  %s1403_s9 = sld [smem:[#allocation26_spill]] }
 0x3f5   : > { %p28_p2 = scmp.ge.s32.totalorder %s31_s12, 4   ;;  %s1407_s30 = smov %s1402_s18 }
 0x3f7   :  { %30 = sbr.rel (!%p28_p2) target bundleno = 14 (0xe), region = 134 }
 0x3fc   :  { %632 = vsyncpa [#allocation7], 1 }
 0x3fd   :  { %634 = vsyncpa [#allocation7 + $0x1], 1 }
 0x3fe   :  { %635 = vsyncpa [#allocation10], 1 }
 0x3ff   :  { %637 = vsyncpa [#allocation10 + $0x1], 1 }
 0x400   :  { %638 = vsyncpa [#allocation13], 1 }
 0x401   :  { %640 = vsyncpa [#allocation13 + $0x1], 1 }
 0x402   :  { %641 = vsyncpa [#allocation8], 1 }
 0x403   :  { %643 = vsyncpa [#allocation8 + $0x1], 1 }
 0x404   :  { %644 = vsyncpa [#allocation16], 1 }

</bundles_post_ra>
